<compile_context>
chip_gen: v7x
topology: tpu7x:2x2x1
jax: 0.10.0
libtpu: 0.0.40
codegen_flags: <defaults>
</compile_context>

<pallas_src>
import jax
import jax.numpy as jnp
from jax import lax
from jax.experimental import pallas as pl
from jax.experimental.pallas import tpu as pltpu


def fused_double_conv_kernel(x_ref, w1_ref, b1_ref, w2_ref, b2_ref,
                             o_ref, y1_ref):
    # x_ref  : (N, H+2, W*Cin)   bf16  row-padded input, (W,Cin) on lanes
    # w1_ref : (3, W*Cin, W*Cout) bf16 banded conv1 weights (BN scale folded)
    # b1_ref : (1, W*Cout)        f32  folded shift, tiled across W
    # w2_ref : (3, W*Cout, W*Cout) bf16 banded conv2 weights (BN scale folded)
    # b2_ref : (1, W*Cout)        f32
    # o_ref  : (N, H, W*Cout)     f32  lane-dense output
    # y1_ref : (H+2, W*Cout)      bf16 VMEM scratch for the intermediate
    nb, hp2, _ = x_ref.shape
    h = hp2 - 2
    wcout = o_ref.shape[-1]
    f32 = jnp.float32
    bf16 = jnp.bfloat16

    # Zero ONLY the two vertical halo rows, once (interior is fully
    # overwritten for every batch image; horizontal padding is folded into
    # the banded weights so there are no halo columns at all).
    zrow = jnp.zeros((1, wcout), bf16)
    y1_ref[0:1, :] = zrow
    y1_ref[h + 1:h + 2, :] = zrow

    for b in range(nb):  # static unroll: batch folded into one grid step
        # ---- conv1 => BN => ReLU : 3 lane-dense row-shift matmuls ----------
        xb = x_ref[b]                                    # (H+2, W*Cin) bf16
        acc = jnp.dot(xb[0:h], w1_ref[0], preferred_element_type=f32)
        acc = acc + jnp.dot(xb[1:h + 1], w1_ref[1], preferred_element_type=f32)
        acc = acc + jnp.dot(xb[2:h + 2], w1_ref[2], preferred_element_type=f32)
        # f32 epilogue, stage intermediate in bf16 (the conv2 operand dtype).
        y1_ref[1:h + 1, :] = jnp.maximum(acc + b1_ref[...], 0.0).astype(bf16)

        # ---- conv2 => BN => ReLU -------------------------------------------
        y1 = y1_ref[...]                                 # (H+2, W*Cout) bf16
        acc = jnp.dot(y1[0:h], w2_ref[0], preferred_element_type=f32)
        acc = acc + jnp.dot(y1[1:h + 1], w2_ref[1], preferred_element_type=f32)
        acc = acc + jnp.dot(y1[2:h + 2], w2_ref[2], preferred_element_type=f32)
        o_ref[b] = jnp.maximum(acc + b2_ref[...], 0.0).astype(o_ref.dtype)


def inconv_forward(x_nchw, params):
    n, cin, h, w = x_nchw.shape
    cout = params["b1"].shape[-1] // w

    # NCHW -> NHWC, pad rows only (horizontal pad lives in the banded
    # weights), flatten (W, Cin) onto the lane axis, cast to bf16.
    x_nhwc = jnp.transpose(x_nchw, (0, 2, 3, 1))
    x_pad = jnp.pad(x_nhwc, ((0, 0), (1, 1), (0, 0), (0, 0)))
    x_lanes = x_pad.reshape(n, h + 2, w * cin).astype(jnp.bfloat16)

    out = pl.pallas_call(
        fused_double_conv_kernel,
        out_shape=jax.ShapeDtypeStruct((n, h, w * cout), jnp.float32),
        grid=(1,),
        in_specs=[
            pl.BlockSpec((n, h + 2, w * cin), lambda i: (0, 0, 0)),
            pl.BlockSpec((3, w * cin, w * cout), lambda i: (0, 0, 0)),
            pl.BlockSpec((1, w * cout), lambda i: (0, 0)),
            pl.BlockSpec((3, w * cout, w * cout), lambda i: (0, 0, 0)),
            pl.BlockSpec((1, w * cout), lambda i: (0, 0)),
        ],
        out_specs=pl.BlockSpec((n, h, w * cout), lambda i: (0, 0, 0)),
        scratch_shapes=[pltpu.VMEM((h + 2, w * cout), jnp.bfloat16)],
        compiler_params=pltpu.CompilerParams(
            dimension_semantics=("arbitrary",)),
    )(x_lanes, params["w1"], params["b1"], params["w2"], params["b2"])

    # (N, H, W*Cout) regrouped is NHWC; NCHW conversion is tiny wrapper
    # layout plumbing (keeps the kernel store lane-dense).
    return jnp.transpose(out.reshape(n, h, w, cout), (0, 3, 1, 2))


def _banded_weights(w_oihw, scale, width):
    """Banded matrices (3, W*Cin, W*Cout) for a 3x3 conv with padding=1.

    big[dy][icol*Cin + ci, col*Cout + co] = w[co, ci, dy, dx] * scale[co]
    where icol = col + dx - 1 (out-of-range columns dropped -> implicit
    horizontal zero padding).  BN scale is folded per output channel.
    """
    w_hwio = jnp.transpose(w_oihw, (2, 3, 1, 0)) * scale  # (3,3,Cin,Cout)
    bands = []
    for dy in range(3):
        m = sum(jnp.kron(jnp.eye(width, k=1 - dx, dtype=jnp.float32),
                         w_hwio[dy, dx]) for dx in range(3))
        bands.append(m)
    return jnp.stack(bands).astype(jnp.bfloat16)


def fold_params(w1_oihw, scale1, shift1, w2_oihw, scale2, shift2, width):
    cout = w1_oihw.shape[0]
    return dict(
        w1=_banded_weights(w1_oihw, scale1, width),   # (3, W*Cin,  W*Cout)
        b1=jnp.tile(shift1, width).reshape(1, width * cout).astype(jnp.float32),
        w2=_banded_weights(w2_oihw, scale2, width),   # (3, W*Cout, W*Cout)
        b2=jnp.tile(shift2, width).reshape(1, width * cout).astype(jnp.float32),
    )


if __name__ == "__main__":
    key = jax.random.PRNGKey(0)
    in_ch, out_ch = 4, 16
    N, H, W = 2, 16, 16
    k1, k2, k3, k4, k5 = jax.random.split(key, 5)

    x = jax.random.normal(k1, (N, in_ch, H, W), jnp.float32)

    # Deterministic synthetic parameters (PyTorch conv weight layout OIHW).
    w1_oihw = jax.random.normal(k2, (out_ch, in_ch, 3, 3), jnp.float32) * 0.1
    b1 = jax.random.normal(k3, (out_ch,), jnp.float32) * 0.1
    w2_oihw = jax.random.normal(k4, (out_ch, out_ch, 3, 3), jnp.float32) * 0.1
    b2 = jax.random.normal(k5, (out_ch,), jnp.float32) * 0.1

    # TODO(synk): BatchNorm is implemented with eval-mode semantics (fresh
    # running stats mean=0, var=1, gamma=1, beta=0); training-mode batch
    # statistics would need an extra cross-batch reduction pass.
    eps = 1e-5
    gamma = jnp.ones((out_ch,), jnp.float32)
    beta = jnp.zeros((out_ch,), jnp.float32)
    rmean = jnp.zeros((out_ch,), jnp.float32)
    rvar = jnp.ones((out_ch,), jnp.float32)
    bn_scale = gamma / jnp.sqrt(rvar + eps)
    shift1 = beta + bn_scale * (b1 - rmean)   # conv bias folded into BN shift
    shift2 = beta + bn_scale * (b2 - rmean)

    params = fold_params(w1_oihw, bn_scale, shift1, w2_oihw, bn_scale, shift2, W)

    fwd = jax.jit(inconv_forward)
    out = jax.block_until_ready(fwd(x, params))
    assert out.shape == (N, out_ch, H, W) and out.dtype == jnp.float32

    # Pure-JAX f32 reference (same math as the PyTorch module in eval mode).
    def ref_conv(xx, w_oihw, b):
        y = lax.conv_general_dilated(
            xx, w_oihw, (1, 1), ((1, 1), (1, 1)),
            dimension_numbers=("NCHW", "OIHW", "NCHW"))
        return y + b[None, :, None, None]

    def ref_bn_relu(y):
        yn = (y - rmean[None, :, None, None]) / jnp.sqrt(
            rvar + eps)[None, :, None, None]
        return jax.nn.relu(yn * gamma[None, :, None, None]
                           + beta[None, :, None, None])

    ref = ref_bn_relu(ref_conv(x, w1_oihw, b1))
    ref = ref_bn_relu(ref_conv(ref, w2_oihw, b2))

    # bf16 matmul operands / bf16-staged intermediate -> loose tolerance.
    assert jnp.allclose(out, ref, atol=5e-2, rtol=5e-2), float(
        jnp.max(jnp.abs(out - ref)))

    print("KERNEL_OK")
</pallas_src>

<mosaic_0001>
module attributes {stable_mosaic.version = 11 : i64} {
  func.func @fused_double_conv_kernel(%arg0: i32, %arg1: memref<2x18x64xbf16, #tpu.memory_space<vmem>>, %arg2: memref<3x64x256xbf16, #tpu.memory_space<vmem>>, %arg3: memref<1x256xf32, #tpu.memory_space<vmem>>, %arg4: memref<3x256x256xbf16, #tpu.memory_space<vmem>>, %arg5: memref<1x256xf32, #tpu.memory_space<vmem>>, %arg6: memref<2x16x256xf32, #tpu.memory_space<vmem>>, %arg7: memref<18x256xbf16, #tpu.memory_space<vmem>>) attributes {dimension_semantics = [#tpu.dimension_semantics<arbitrary>], iteration_bounds = array<i64: 1>, scalar_prefetch = 0 : i64, scratch_operands = 1 : i64, tpu.core_type = #tpu.core_type<tc>, window_params = [{pipeline_mode = #tpu.pipeline_mode<synchronous>, transform_indices = @transform_0, window_bounds = array<i64: 2, 18, 64>}, {pipeline_mode = #tpu.pipeline_mode<synchronous>, transform_indices = @transform_1, window_bounds = array<i64: 3, 64, 256>}, {pipeline_mode = #tpu.pipeline_mode<synchronous>, transform_indices = @transform_2, window_bounds = array<i64: 1, 256>}, {pipeline_mode = #tpu.pipeline_mode<synchronous>, transform_indices = @transform_3, window_bounds = array<i64: 3, 256, 256>}, {pipeline_mode = #tpu.pipeline_mode<synchronous>, transform_indices = @transform_4, window_bounds = array<i64: 1, 256>}, {pipeline_mode = #tpu.pipeline_mode<synchronous>, transform_indices = @transform_5, window_bounds = array<i64: 2, 16, 256>}]} {
    %cst = arith.constant 0.000000e+00 : bf16
    %0 = vector.broadcast %cst : bf16 to vector<1x256xbf16>
    %c0 = arith.constant 0 : index
    %c0_0 = arith.constant 0 : index
    %1 = vector.load %arg7[%c0, %c0_0] : memref<18x256xbf16, #tpu.memory_space<vmem>>, vector<1x256xbf16>
    tpu.vector_store %arg7[%c0, %c0_0], %0 {strides = array<i32>} : memref<18x256xbf16, #tpu.memory_space<vmem>>, vector<1x256xbf16>,
    %c17 = arith.constant 17 : index
    %c0_1 = arith.constant 0 : index
    %2 = vector.load %arg7[%c17, %c0_1] : memref<18x256xbf16, #tpu.memory_space<vmem>>, vector<1x256xbf16>
    tpu.vector_store %arg7[%c17, %c0_1], %0 {strides = array<i32>} : memref<18x256xbf16, #tpu.memory_space<vmem>>, vector<1x256xbf16>,
    %c0_2 = arith.constant 0 : index
    %c0_3 = arith.constant 0 : index
    %c0_4 = arith.constant 0 : index
    %3 = vector.load %arg1[%c0_2, %c0_3, %c0_4] : memref<2x18x64xbf16, #tpu.memory_space<vmem>>, vector<1x18x64xbf16>
    %4 = vector.shape_cast %3 : vector<1x18x64xbf16> to vector<18x64xbf16>
    %5 = vector.extract_strided_slice %4 {offsets = [0, 0], sizes = [16, 64], strides = [1, 1]} : vector<18x64xbf16> to vector<16x64xbf16>
    %c0_5 = arith.constant 0 : index
    %c0_6 = arith.constant 0 : index
    %c0_7 = arith.constant 0 : index
    %6 = vector.load %arg2[%c0_5, %c0_6, %c0_7] : memref<3x64x256xbf16, #tpu.memory_space<vmem>>, vector<1x64x256xbf16>
    %7 = vector.shape_cast %6 : vector<1x64x256xbf16> to vector<64x256xbf16>
    %cst_8 = arith.constant dense<0.000000e+00> : vector<16x256xf32>
    %8 = tpu.matmul %5, %7, %cst_8 {dimension_numbers = #tpu.dot_dimension_numbers<[1], [0], [0], [1], [0, 0, 1, 1], [], []>} : vector<16x64xbf16>, vector<64x256xbf16>, vector<16x256xf32> -> vector<16x256xf32>
    %9 = vector.extract_strided_slice %4 {offsets = [1, 0], sizes = [16, 64], strides = [1, 1]} : vector<18x64xbf16> to vector<16x64xbf16>
    %c1 = arith.constant 1 : index
    %c0_9 = arith.constant 0 : index
    %c0_10 = arith.constant 0 : index
    %10 = vector.load %arg2[%c1, %c0_9, %c0_10] : memref<3x64x256xbf16, #tpu.memory_space<vmem>>, vector<1x64x256xbf16>
    %11 = vector.shape_cast %10 : vector<1x64x256xbf16> to vector<64x256xbf16>
    %cst_11 = arith.constant dense<0.000000e+00> : vector<16x256xf32>
    %12 = tpu.matmul %9, %11, %cst_11 {dimension_numbers = #tpu.dot_dimension_numbers<[1], [0], [0], [1], [0, 0, 1, 1], [], []>} : vector<16x64xbf16>, vector<64x256xbf16>, vector<16x256xf32> -> vector<16x256xf32>
    %13 = arith.addf %8, %12 : vector<16x256xf32>
    %14 = vector.extract_strided_slice %4 {offsets = [2, 0], sizes = [16, 64], strides = [1, 1]} : vector<18x64xbf16> to vector<16x64xbf16>
    %c2 = arith.constant 2 : index
    %c0_12 = arith.constant 0 : index
    %c0_13 = arith.constant 0 : index
    %15 = vector.load %arg2[%c2, %c0_12, %c0_13] : memref<3x64x256xbf16, #tpu.memory_space<vmem>>, vector<1x64x256xbf16>
    %16 = vector.shape_cast %15 : vector<1x64x256xbf16> to vector<64x256xbf16>
    %cst_14 = arith.constant dense<0.000000e+00> : vector<16x256xf32>
    %17 = tpu.matmul %14, %16, %cst_14 {dimension_numbers = #tpu.dot_dimension_numbers<[1], [0], [0], [1], [0, 0, 1, 1], [], []>} : vector<16x64xbf16>, vector<64x256xbf16>, vector<16x256xf32> -> vector<16x256xf32>
    %18 = arith.addf %13, %17 : vector<16x256xf32>
    %c0_15 = arith.constant 0 : index
    %c0_16 = arith.constant 0 : index
    %19 = vector.load %arg3[%c0_15, %c0_16] : memref<1x256xf32, #tpu.memory_space<vmem>>, vector<1x256xf32>
    %20 = vector.broadcast %19 : vector<1x256xf32> to vector<16x256xf32>
    %21 = arith.addf %18, %20 : vector<16x256xf32>
    %cst_17 = arith.constant 0.000000e+00 : f32
    %22 = vector.broadcast %cst_17 : f32 to vector<16x256xf32>
    %23 = arith.maximumf %21, %22 : vector<16x256xf32>
    %24 = arith.truncf %23 : vector<16x256xf32> to vector<16x256xbf16>
    %c1_18 = arith.constant 1 : index
    %c0_19 = arith.constant 0 : index
    %25 = vector.load %arg7[%c1_18, %c0_19] : memref<18x256xbf16, #tpu.memory_space<vmem>>, vector<16x256xbf16>
    tpu.vector_store %arg7[%c1_18, %c0_19], %24 {strides = array<i32>} : memref<18x256xbf16, #tpu.memory_space<vmem>>, vector<16x256xbf16>,
    %c0_20 = arith.constant 0 : index
    %c0_21 = arith.constant 0 : index
    %26 = vector.load %arg7[%c0_20, %c0_21] : memref<18x256xbf16, #tpu.memory_space<vmem>>, vector<18x256xbf16>
    %27 = vector.extract_strided_slice %26 {offsets = [0, 0], sizes = [16, 256], strides = [1, 1]} : vector<18x256xbf16> to vector<16x256xbf16>
    %c0_22 = arith.constant 0 : index
    %c0_23 = arith.constant 0 : index
    %c0_24 = arith.constant 0 : index
    %28 = vector.load %arg4[%c0_22, %c0_23, %c0_24] : memref<3x256x256xbf16, #tpu.memory_space<vmem>>, vector<1x256x256xbf16>
    %29 = vector.shape_cast %28 : vector<1x256x256xbf16> to vector<256x256xbf16>
    %cst_25 = arith.constant dense<0.000000e+00> : vector<16x256xf32>
    %30 = tpu.matmul %27, %29, %cst_25 {dimension_numbers = #tpu.dot_dimension_numbers<[1], [0], [0], [1], [0, 0, 1, 1], [], []>} : vector<16x256xbf16>, vector<256x256xbf16>, vector<16x256xf32> -> vector<16x256xf32>
    %31 = vector.extract_strided_slice %26 {offsets = [1, 0], sizes = [16, 256], strides = [1, 1]} : vector<18x256xbf16> to vector<16x256xbf16>
    %c1_26 = arith.constant 1 : index
    %c0_27 = arith.constant 0 : index
    %c0_28 = arith.constant 0 : index
    %32 = vector.load %arg4[%c1_26, %c0_27, %c0_28] : memref<3x256x256xbf16, #tpu.memory_space<vmem>>, vector<1x256x256xbf16>
    %33 = vector.shape_cast %32 : vector<1x256x256xbf16> to vector<256x256xbf16>
    %cst_29 = arith.constant dense<0.000000e+00> : vector<16x256xf32>
    %34 = tpu.matmul %31, %33, %cst_29 {dimension_numbers = #tpu.dot_dimension_numbers<[1], [0], [0], [1], [0, 0, 1, 1], [], []>} : vector<16x256xbf16>, vector<256x256xbf16>, vector<16x256xf32> -> vector<16x256xf32>
    %35 = arith.addf %30, %34 : vector<16x256xf32>
    %36 = vector.extract_strided_slice %26 {offsets = [2, 0], sizes = [16, 256], strides = [1, 1]} : vector<18x256xbf16> to vector<16x256xbf16>
    %c2_30 = arith.constant 2 : index
    %c0_31 = arith.constant 0 : index
    %c0_32 = arith.constant 0 : index
    %37 = vector.load %arg4[%c2_30, %c0_31, %c0_32] : memref<3x256x256xbf16, #tpu.memory_space<vmem>>, vector<1x256x256xbf16>
    %38 = vector.shape_cast %37 : vector<1x256x256xbf16> to vector<256x256xbf16>
    %cst_33 = arith.constant dense<0.000000e+00> : vector<16x256xf32>
    %39 = tpu.matmul %36, %38, %cst_33 {dimension_numbers = #tpu.dot_dimension_numbers<[1], [0], [0], [1], [0, 0, 1, 1], [], []>} : vector<16x256xbf16>, vector<256x256xbf16>, vector<16x256xf32> -> vector<16x256xf32>
    %40 = arith.addf %35, %39 : vector<16x256xf32>
    %c0_34 = arith.constant 0 : index
    %c0_35 = arith.constant 0 : index
    %41 = vector.load %arg5[%c0_34, %c0_35] : memref<1x256xf32, #tpu.memory_space<vmem>>, vector<1x256xf32>
    %42 = vector.broadcast %41 : vector<1x256xf32> to vector<16x256xf32>
    %43 = arith.addf %40, %42 : vector<16x256xf32>
    %cst_36 = arith.constant 0.000000e+00 : f32
    %44 = vector.broadcast %cst_36 : f32 to vector<16x256xf32>
    %45 = arith.maximumf %43, %44 : vector<16x256xf32>
    %c0_37 = arith.constant 0 : index
    %c0_38 = arith.constant 0 : index
    %c0_39 = arith.constant 0 : index
    %46 = vector.load %arg6[%c0_37, %c0_38, %c0_39] : memref<2x16x256xf32, #tpu.memory_space<vmem>>, vector<1x16x256xf32>
    %47 = vector.shape_cast %46 : vector<1x16x256xf32> to vector<16x256xf32>
    %48 = vector.shape_cast %45 : vector<16x256xf32> to vector<1x16x256xf32>
    tpu.vector_store %arg6[%c0_37, %c0_38, %c0_39], %48 {strides = array<i32>} : memref<2x16x256xf32, #tpu.memory_space<vmem>>, vector<1x16x256xf32>,
    %c1_40 = arith.constant 1 : index
    %c0_41 = arith.constant 0 : index
    %c0_42 = arith.constant 0 : index
    %49 = vector.load %arg1[%c1_40, %c0_41, %c0_42] : memref<2x18x64xbf16, #tpu.memory_space<vmem>>, vector<1x18x64xbf16>
    %50 = vector.shape_cast %49 : vector<1x18x64xbf16> to vector<18x64xbf16>
    %51 = vector.extract_strided_slice %50 {offsets = [0, 0], sizes = [16, 64], strides = [1, 1]} : vector<18x64xbf16> to vector<16x64xbf16>
    %c0_43 = arith.constant 0 : index
    %c0_44 = arith.constant 0 : index
    %c0_45 = arith.constant 0 : index
    %52 = vector.load %arg2[%c0_43, %c0_44, %c0_45] : memref<3x64x256xbf16, #tpu.memory_space<vmem>>, vector<1x64x256xbf16>
    %53 = vector.shape_cast %52 : vector<1x64x256xbf16> to vector<64x256xbf16>
    %cst_46 = arith.constant dense<0.000000e+00> : vector<16x256xf32>
    %54 = tpu.matmul %51, %53, %cst_46 {dimension_numbers = #tpu.dot_dimension_numbers<[1], [0], [0], [1], [0, 0, 1, 1], [], []>} : vector<16x64xbf16>, vector<64x256xbf16>, vector<16x256xf32> -> vector<16x256xf32>
    %55 = vector.extract_strided_slice %50 {offsets = [1, 0], sizes = [16, 64], strides = [1, 1]} : vector<18x64xbf16> to vector<16x64xbf16>
    %c1_47 = arith.constant 1 : index
    %c0_48 = arith.constant 0 : index
    %c0_49 = arith.constant 0 : index
    %56 = vector.load %arg2[%c1_47, %c0_48, %c0_49] : memref<3x64x256xbf16, #tpu.memory_space<vmem>>, vector<1x64x256xbf16>
    %57 = vector.shape_cast %56 : vector<1x64x256xbf16> to vector<64x256xbf16>
    %cst_50 = arith.constant dense<0.000000e+00> : vector<16x256xf32>
    %58 = tpu.matmul %55, %57, %cst_50 {dimension_numbers = #tpu.dot_dimension_numbers<[1], [0], [0], [1], [0, 0, 1, 1], [], []>} : vector<16x64xbf16>, vector<64x256xbf16>, vector<16x256xf32> -> vector<16x256xf32>
    %59 = arith.addf %54, %58 : vector<16x256xf32>
    %60 = vector.extract_strided_slice %50 {offsets = [2, 0], sizes = [16, 64], strides = [1, 1]} : vector<18x64xbf16> to vector<16x64xbf16>
    %c2_51 = arith.constant 2 : index
    %c0_52 = arith.constant 0 : index
    %c0_53 = arith.constant 0 : index
    %61 = vector.load %arg2[%c2_51, %c0_52, %c0_53] : memref<3x64x256xbf16, #tpu.memory_space<vmem>>, vector<1x64x256xbf16>
    %62 = vector.shape_cast %61 : vector<1x64x256xbf16> to vector<64x256xbf16>
    %cst_54 = arith.constant dense<0.000000e+00> : vector<16x256xf32>
    %63 = tpu.matmul %60, %62, %cst_54 {dimension_numbers = #tpu.dot_dimension_numbers<[1], [0], [0], [1], [0, 0, 1, 1], [], []>} : vector<16x64xbf16>, vector<64x256xbf16>, vector<16x256xf32> -> vector<16x256xf32>
    %64 = arith.addf %59, %63 : vector<16x256xf32>
    %c0_55 = arith.constant 0 : index
    %c0_56 = arith.constant 0 : index
    %65 = vector.load %arg3[%c0_55, %c0_56] : memref<1x256xf32, #tpu.memory_space<vmem>>, vector<1x256xf32>
    %66 = vector.broadcast %65 : vector<1x256xf32> to vector<16x256xf32>
    %67 = arith.addf %64, %66 : vector<16x256xf32>
    %cst_57 = arith.constant 0.000000e+00 : f32
    %68 = vector.broadcast %cst_57 : f32 to vector<16x256xf32>
    %69 = arith.maximumf %67, %68 : vector<16x256xf32>
    %70 = arith.truncf %69 : vector<16x256xf32> to vector<16x256xbf16>
    %c1_58 = arith.constant 1 : index
    %c0_59 = arith.constant 0 : index
    %71 = vector.load %arg7[%c1_58, %c0_59] : memref<18x256xbf16, #tpu.memory_space<vmem>>, vector<16x256xbf16>
    tpu.vector_store %arg7[%c1_58, %c0_59], %70 {strides = array<i32>} : memref<18x256xbf16, #tpu.memory_space<vmem>>, vector<16x256xbf16>,
    %c0_60 = arith.constant 0 : index
    %c0_61 = arith.constant 0 : index
    %72 = vector.load %arg7[%c0_60, %c0_61] : memref<18x256xbf16, #tpu.memory_space<vmem>>, vector<18x256xbf16>
    %73 = vector.extract_strided_slice %72 {offsets = [0, 0], sizes = [16, 256], strides = [1, 1]} : vector<18x256xbf16> to vector<16x256xbf16>
    %c0_62 = arith.constant 0 : index
    %c0_63 = arith.constant 0 : index
    %c0_64 = arith.constant 0 : index
    %74 = vector.load %arg4[%c0_62, %c0_63, %c0_64] : memref<3x256x256xbf16, #tpu.memory_space<vmem>>, vector<1x256x256xbf16>
    %75 = vector.shape_cast %74 : vector<1x256x256xbf16> to vector<256x256xbf16>
    %cst_65 = arith.constant dense<0.000000e+00> : vector<16x256xf32>
    %76 = tpu.matmul %73, %75, %cst_65 {dimension_numbers = #tpu.dot_dimension_numbers<[1], [0], [0], [1], [0, 0, 1, 1], [], []>} : vector<16x256xbf16>, vector<256x256xbf16>, vector<16x256xf32> -> vector<16x256xf32>
    %77 = vector.extract_strided_slice %72 {offsets = [1, 0], sizes = [16, 256], strides = [1, 1]} : vector<18x256xbf16> to vector<16x256xbf16>
    %c1_66 = arith.constant 1 : index
    %c0_67 = arith.constant 0 : index
    %c0_68 = arith.constant 0 : index
    %78 = vector.load %arg4[%c1_66, %c0_67, %c0_68] : memref<3x256x256xbf16, #tpu.memory_space<vmem>>, vector<1x256x256xbf16>
    %79 = vector.shape_cast %78 : vector<1x256x256xbf16> to vector<256x256xbf16>
    %cst_69 = arith.constant dense<0.000000e+00> : vector<16x256xf32>
    %80 = tpu.matmul %77, %79, %cst_69 {dimension_numbers = #tpu.dot_dimension_numbers<[1], [0], [0], [1], [0, 0, 1, 1], [], []>} : vector<16x256xbf16>, vector<256x256xbf16>, vector<16x256xf32> -> vector<16x256xf32>
    %81 = arith.addf %76, %80 : vector<16x256xf32>
    %82 = vector.extract_strided_slice %72 {offsets = [2, 0], sizes = [16, 256], strides = [1, 1]} : vector<18x256xbf16> to vector<16x256xbf16>
    %c2_70 = arith.constant 2 : index
    %c0_71 = arith.constant 0 : index
    %c0_72 = arith.constant 0 : index
    %83 = vector.load %arg4[%c2_70, %c0_71, %c0_72] : memref<3x256x256xbf16, #tpu.memory_space<vmem>>, vector<1x256x256xbf16>
    %84 = vector.shape_cast %83 : vector<1x256x256xbf16> to vector<256x256xbf16>
    %cst_73 = arith.constant dense<0.000000e+00> : vector<16x256xf32>
    %85 = tpu.matmul %82, %84, %cst_73 {dimension_numbers = #tpu.dot_dimension_numbers<[1], [0], [0], [1], [0, 0, 1, 1], [], []>} : vector<16x256xbf16>, vector<256x256xbf16>, vector<16x256xf32> -> vector<16x256xf32>
    %86 = arith.addf %81, %85 : vector<16x256xf32>
    %c0_74 = arith.constant 0 : index
    %c0_75 = arith.constant 0 : index
    %87 = vector.load %arg5[%c0_74, %c0_75] : memref<1x256xf32, #tpu.memory_space<vmem>>, vector<1x256xf32>
    %88 = vector.broadcast %87 : vector<1x256xf32> to vector<16x256xf32>
    %89 = arith.addf %86, %88 : vector<16x256xf32>
    %cst_76 = arith.constant 0.000000e+00 : f32
    %90 = vector.broadcast %cst_76 : f32 to vector<16x256xf32>
    %91 = arith.maximumf %89, %90 : vector<16x256xf32>
    %c1_77 = arith.constant 1 : index
    %c0_78 = arith.constant 0 : index
    %c0_79 = arith.constant 0 : index
    %92 = vector.load %arg6[%c1_77, %c0_78, %c0_79] : memref<2x16x256xf32, #tpu.memory_space<vmem>>, vector<1x16x256xf32>
    %93 = vector.shape_cast %92 : vector<1x16x256xf32> to vector<16x256xf32>
    %94 = vector.shape_cast %91 : vector<16x256xf32> to vector<1x16x256xf32>
    tpu.vector_store %arg6[%c1_77, %c0_78, %c0_79], %94 {strides = array<i32>} : memref<2x16x256xf32, #tpu.memory_space<vmem>>, vector<1x16x256xf32>,
    return
  }
  func.func @transform_0(%arg0: i32) -> (i32, i32, i32) {
    %c0_i32 = arith.constant 0 : i32
    %c0_i32_0 = arith.constant 0 : i32
    %c0_i32_1 = arith.constant 0 : i32
    %c0_i32_2 = arith.constant 0 : i32
    return %c0_i32, %c0_i32_0, %c0_i32_1 : i32, i32, i32
  }
  func.func @transform_1(%arg0: i32) -> (i32, i32, i32) {
    %c0_i32 = arith.constant 0 : i32
    %c0_i32_0 = arith.constant 0 : i32
    %c0_i32_1 = arith.constant 0 : i32
    %c0_i32_2 = arith.constant 0 : i32
    return %c0_i32, %c0_i32_0, %c0_i32_1 : i32, i32, i32
  }
  func.func @transform_2(%arg0: i32) -> (i32, i32) {
    %c0_i32 = arith.constant 0 : i32
    %c0_i32_0 = arith.constant 0 : i32
    %c0_i32_1 = arith.constant 0 : i32
    return %c0_i32, %c0_i32_0 : i32, i32
  }
  func.func @transform_3(%arg0: i32) -> (i32, i32, i32) {
    %c0_i32 = arith.constant 0 : i32
    %c0_i32_0 = arith.constant 0 : i32
    %c0_i32_1 = arith.constant 0 : i32
    %c0_i32_2 = arith.constant 0 : i32
    return %c0_i32, %c0_i32_0, %c0_i32_1 : i32, i32, i32
  }
  func.func @transform_4(%arg0: i32) -> (i32, i32) {
    %c0_i32 = arith.constant 0 : i32
    %c0_i32_0 = arith.constant 0 : i32
    %c0_i32_1 = arith.constant 0 : i32
    return %c0_i32, %c0_i32_0 : i32, i32
  }
  func.func @transform_5(%arg0: i32) -> (i32, i32, i32) {
    %c0_i32 = arith.constant 0 : i32
    %c0_i32_0 = arith.constant 0 : i32
    %c0_i32_1 = arith.constant 0 : i32
    %c0_i32_2 = arith.constant 0 : i32
    return %c0_i32, %c0_i32_0, %c0_i32_1 : i32, i32, i32
  }
}

</mosaic_0001>

<bundles_post_ra>
// kernel: inconv_forward.1
= control target key start
LH: loop header
LB: loop body
LE: loop exit
PB: predicated region body
PF: predicated region fallthrough
CT: control target
= control target key end

     0   :  { %10 = vsyncpa [#allocation4], 0  ;;  %s2981_s18 = smov [#allocation3]   ;;  %s3513_s0 = inlined_call_operand.vmem [shape: bf16[2,18,64], index: 0, kind: input, shape index: {}]   ;;  %s3514_s1 = inlined_call_operand.vmem [shape: bf16[3,64,256], index: 1, kind: input, shape index: {}]   ;;  %s3515_s2 = inlined_call_operand.vmem [shape: f32[1,256], index: 2, kind: input, shape index: {}]   ;;  %s3516_s3 = inlined_call_operand.hbm [shape: bf16[3,256,256], index: 3, kind: input, shape index: {}]   ;;  %s3517_s4 = inlined_call_operand.vmem [shape: f32[1,256], index: 4, kind: input, shape index: {}]   ;;  %s3518_s5 = inlined_call_operand.vmem [shape: f32[2,16,256], index: 5, kind: output, shape index: {}]  }
   0x1   :  { %s22_s19 = sshll.u32 %s2981_s18, 4  ;;  %s2957_s22 = scalar_lea.hbm %s3516_s3, 12288  ;;  %s23_s19 = int_to_ptr.vmem [resolvable:$true] %s22_s19 }
   0x2   :  { %p2958_p0 = scmp.ne.s32.totalorder %s3516_s3, %s2957_s22  ;;  %p2961_p1 = scmp.lt.u32.totalorder %s2957_s22, %s3516_s3 }
   0x4   :  { %p2963_p2 = pnand %p2961_p1, %p2958_p0 }
   0x6   :  { %2966 = shalt.err (!%p2963_p2)
}
   0x7   :  { %s2967_s27 = scalar_lea.vmem %s23_s19, 12288  ;;  %p2972_p4 = scmp.lt.s32.totalorder %s23_s19, %s23_s19 }
   0x8   :  { %p2968_p3 = scmp.ne.s32.totalorder %s23_s19, %s2967_s27  ;;  %p2973_p5 = scmp.lt.s32.totalorder %s2967_s27, %s2967_s27 }
   0xa   :  { %p2974_p6 = por %p2973_p5, %p2972_p4 }
   0xc   :  { %p2975_p7 = pnand %p2974_p6, %p2968_p3 }
   0xe   :  { %2978 = shalt.err (!%p2975_p7)
}
   0xf   :  { %s2982_s28 = smov 128   ;;  %s2983_s29 = smov 8  }
  0x10   :  { %28 = dma.hbm_to_vmem [thread:$0]  %s3516_s3, 12288, %s23_s19, [#allocation4], %s2982_s28, %s2982_s28, %s2983_s29  }
  0x11   :  { %2979 = dma.done.wait [#allocation4], 12288  }
  0x12   :  { %2980 = vsyncadd [#allocation4], 4294955008  ;;  %v2984_v0 = vmov 0   ;;  %v3031_v1 = vld [vmem:[%s3514_s1 + $0x44] ss:$8 sps:$4 sm:$0xff]   ;;  %vm134_vm1 = vcmask 523264  }
  0x13   :  { %170 = vmatprep.mubr.bf16.mxu0 %v2984_v0  ;;  %v3036_v2 = vld [vmem:[%s3514_s1 + $0x40] ss:$8 sps:$4 sm:$0xff]   ;;  %138 = vmatprep.subr.bf16.mxu0 %v3031_v1  ;;  %v3042_v3 = vld [vmem:[%s3514_s1 + $0x54] ss:$8 sps:$4 sm:$0xff]   ;;  %v3048_v4 = vld [vmem:[%s3514_s1 + $0x50] ss:$8 sps:$4 sm:$0xff]  }
  0x14   :  { %139 = vmatpush1.bf16.msra.mxu0 %v3036_v2  ;;  %v3054_v5 = vld [vmem:[%s3514_s1 + $0x64] ss:$8 sps:$4 sm:$0xff]   ;;  %v3059_v6 = vld [vmem:[%s3514_s1 + $0x60] ss:$8 sps:$4 sm:$0xff]   ;;  %v3064_v7 = vld [vmem:[%s3514_s1 + $0x74] ss:$8 sps:$4 sm:$0xff]  }
  0x15   :  { %140 = vmatprep.subr.bf16.mxu0 %v3042_v3  ;;  %v3070_v8 = vld [vmem:[%s3513_s0] sm:$0xff]   ;;  %v3076_v9 = vld [vmem:[%s3513_s0 + $0x8] ss:$0 sps:$4 sm:$0x11]   ;;  %v3085_v13 = vld [vmem:[%s3514_s1 + $0x70] ss:$8 sps:$4 sm:$0xff]  }
  0x16   :  { %v83_v10 = vshrl.u32 %v3070_v8, 16  ;;  %v85_v11 = vshll.u32 %v3070_v8, 16  ;;  %v90_v12 = vshll.u32 %v3076_v9, 16  ;;  %v3091_v15 = vld [vmem:[%s3514_s1 + $0x4] ss:$8 sps:$4 sm:$0xff]   ;;  %v276_v48 = vrot.slane %v3070_v8, 1 }
  0x17   :  { %vm81_vm0 = vsmask.f32 7424  ;;  %v3097_v18 = vld [vmem:[%s3514_s1] ss:$8 sps:$4 sm:$0xff]   ;;  %v3104_v20 = vld [vmem:[%s3514_s1 + $0x14] ss:$8 sps:$4 sm:$0xff]  }
  0x18   :  { %141 = vmatpush1.bf16.msra.mxu0 %v3048_v4  ;;  %v87_v14 = vrot.slane %v85_v11, 1  ;;  %v92_v16 = vrot.slane %v90_v12, 1  ;;  %v3111_v21 = vld [vmem:[%s3514_s1 + $0x10] ss:$8 sps:$4 sm:$0xff]   ;;  %v3116_v22 = vld [vmem:[%s3514_s1 + $0x24] ss:$8 sps:$4 sm:$0xff]  }
  0x19   :  { %142 = vmatprep.subr.bf16.mxu0 %v3054_v5  ;;  %v2761_v23 = vld [vmem:[#allocation3 + $0x104] ss:$8 sps:$4 sm:$0xff]   ;;  %v2763_v24 = vld [vmem:[#allocation3 + $0x100] ss:$8 sps:$4 sm:$0xff]   ;;  %v2764_v26 = vld [vmem:[#allocation3 + $0x114] ss:$8 sps:$4 sm:$0xff]  }
  0x1a   :  { %v88_v17 = vor.u32 %v87_v14, %v83_v10  ;;  %v3123_v25 = vld [vmem:[%s3514_s1 + $0x20] ss:$8 sps:$4 sm:$0xff]   ;;  %700 = vmatprep.subr.bf16.mxu1 %v2761_v23  ;;  %v3130_v28 = vld [vmem:[%s3514_s1 + $0x34] ss:$8 sps:$4 sm:$0xff]   ;;  %v3135_v30 = vld [vmem:[%s3514_s1 + $0x30] ss:$8 sps:$4 sm:$0xff]  }
  0x1b   :  { %701 = vmatpush1.bf16.msra.mxu1 %v2763_v24  ;;  %v2766_v27 = vld [vmem:[#allocation3 + $0x110] ss:$8 sps:$4 sm:$0xff]   ;;  %v2767_v29 = vld [vmem:[#allocation3 + $0x124] ss:$8 sps:$4 sm:$0xff]   ;;  %v2769_v32 = vld [vmem:[#allocation3 + $0x120] ss:$8 sps:$4 sm:$0xff]  }
  0x1c   :  { %143 = vmatpush1.bf16.msra.mxu0 %v3059_v6  ;;  %v93_v19 = vsel %vm81_vm0, %v88_v17, %v92_v16  ;;  %702 = vmatprep.subr.bf16.mxu1 %v2764_v26  ;;  %v3141_v31 = vld [vmem:[%s3514_s1 + $0x84] ss:$8 sps:$4 sm:$0xff]   ;;  %v3147_v34 = vld [vmem:[%s3514_s1 + $0x80] ss:$8 sps:$4 sm:$0xff]   ;;  %v3152_v35 = vld [vmem:[%s3514_s1 + $0x94] ss:$8 sps:$4 sm:$0xff]  }
  0x1d   :  { %144 = vmatprep.subr.bf16.mxu0 %v3064_v7  ;;  %v2770_v33 = vld [vmem:[#allocation3 + $0x134] ss:$8 sps:$4 sm:$0xff]   ;;  %v2772_v36 = vld [vmem:[#allocation3 + $0x130] ss:$8 sps:$4 sm:$0xff]   ;;  %v2773_v37 = vld [vmem:[#allocation3 + $0x144] ss:$8 sps:$4 sm:$0xff]  }
  0x1e   :  { %v3159_v38 = vld [vmem:[%s3514_s1 + $0x90] ss:$8 sps:$4 sm:$0xff]   ;;  %v3166_v39 = vld [vmem:[%s3514_s1 + $0xa4] ss:$8 sps:$4 sm:$0xff]   ;;  %v2753_v42 = vld [vmem:[%s3514_s1 + $0xa0] ss:$8 sps:$4 sm:$0xff]  }
  0x1f   :  { %703 = vmatpush1.bf16.msra.mxu1 %v2766_v27  ;;  %v2775_v40 = vld [vmem:[#allocation3 + $0x140] ss:$8 sps:$4 sm:$0xff]   ;;  %v2776_v41 = vld [vmem:[#allocation3 + $0x154] ss:$8 sps:$4 sm:$0xff]   ;;  %v2778_v44 = vld [vmem:[#allocation3 + $0x150] ss:$8 sps:$4 sm:$0xff]  }
  0x20   :  { %145 = vmatpush1.bf16.msra.mxu0 %v3085_v13  ;;  %704 = vmatprep.subr.bf16.mxu1 %v2767_v29  ;;  %v2758_v43 = vld [vmem:[%s3514_s1 + $0xb4] ss:$8 sps:$4 sm:$0xff]   ;;  %v2756_v46 = vld [vmem:[%s3514_s1 + $0xb0] ss:$8 sps:$4 sm:$0xff]   ;;  %v277_v49 = vrot.slane %v3076_v9, 1  ;;  %vm275_vm2 = vcmask 1046528  }
  0x21   :  { %223 = vmatprep.subr.bf16.mxu0 %v3091_v15  ;;  %v2779_v45 = vld [vmem:[#allocation3 + $0x164] ss:$8 sps:$4 sm:$0xff]   ;;  %v2781_v47 = vld [vmem:[#allocation3 + $0x160] ss:$8 sps:$4 sm:$0xff]   ;;  %v2782_v50 = vld [vmem:[#allocation3 + $0x174] ss:$8 sps:$4 sm:$0xff]  }
  0x22   :  { %v2759_v51 = vld [vmem:[%s3513_s0 + $0xc] sm:$0xff]   ;;  %v278_v53 = vsel %vm275_vm2, %v276_v48, %v277_v49  ;;  %v2760_v54 = vld [vmem:[%s3513_s0 + $0x14] ss:$0 sps:$4 sm:$0x11]   ;;  %vm35_vm3 = vcmask 1040384   ;;  %vm38_vm5 = vcmask 1044484  }
  0x23   :  { %2398 = vmatmul.mubr.msk.bf16.vlgmr.msra.gmra.mrb[0].mxu0 %vm134_vm1, %v93_v19  ;;  %705 = vmatpush1.bf16.msra.mxu1 %v2769_v32  ;;  %v2784_v52 = vld [vmem:[#allocation3 + $0x170] ss:$8 sps:$4 sm:$0xff]   ;;  %v1251_v55 = vshll.u32 %v2759_v51, 16  ;;  %v1249_v56 = vshrl.u32 %v2759_v51, 16  ;;  %v1256_v58 = vshll.u32 %v2760_v54, 16  ;;  %v1439_v62 = vrot.slane %v2759_v51, 1 }
  0x24   :  { %224 = vmatpush1.bf16.msra.mxu0 %v3097_v18  ;;  %255 = vmatprep.mubr.bf16.mxu0 %v2984_v0  ;;  %v1440_v63 = vrot.slane %v2760_v54, 1  ;;  %vm36_vm4 = vsmask.f32 256  ;;  %vm39_vm6 = vsmask.f32 4352  ;;  %vm421_vm15 = vcmask 1043456  }
  0x25   :  { %225 = vmatprep.subr.bf16.mxu0 %v3104_v20  ;;  %706 = vmatprep.subr.bf16.mxu1 %v2770_v33  ;;  %v1253_v57 = vrot.slane %v1251_v55, 1  ;;  %v1258_v60 = vrot.slane %v1256_v58, 1  ;;  %vm37_vm7 = vmand %vm35_vm3, %vm36_vm4  ;;  %vm45_vm8 = vsmask.f32 7938  ;;  %vm47_vm10 = vsmask.f32 7954 }
  0x26   :  { %vm40_vm9 = vmand %vm38_vm5, %vm39_vm6  ;;  %v3231_v9 = vld [vmem:[#allocation3] ss:$8 sps:$4 sm:$0xff]   ;;  %v2791_v11 = vld [vmem:[#allocation3 + $0x1a4] ss:$8 sps:$4 sm:$0xff]  }
  0x27   :  { %707 = vmatpush1.bf16.msra.mxu1 %v2772_v36  ;;  %v1254_v59 = vor.u32 %v1253_v57, %v1249_v56  ;;  %vm3227_vm11 = vmor %vm40_vm9, %vm37_vm7  ;;  %v3237_v12 = vld [vmem:[#allocation3 + $0x10] ss:$8 sps:$4 sm:$0xff]   ;;  %v3242_v14 = vld [vmem:[#allocation3 + $0x14] ss:$8 sps:$4 sm:$0xff]   ;;  %v371_v57 = vlaneseq  ;;  %vm399_vm7 = vsmask.f32 4368 }
  0x28   :  { %226 = vmatpush1.bf16.msra.mxu0 %v3111_v21  ;;  %708 = vmatprep.subr.bf16.mxu1 %v2773_v37  ;;  %vm46_vm12 = vmand %vm35_vm3, %vm45_vm8  ;;  %v3245_v16 = vld [vmem:[#allocation3 + $0x24] ss:$8 sps:$4 sm:$0xff]   ;;  %v2797_v17 = vld [vmem:[#allocation3 + $0x1b4] ss:$8 sps:$4 sm:$0xff]  }
  0x29   :  { %227 = vmatprep.subr.bf16.mxu0 %v3116_v22  ;;  %v1259_v61 = vsel %vm81_vm0, %v1254_v59, %v1258_v60  ;;  %vm48_vm13 = vmand %vm38_vm5, %vm47_vm10  ;;  %v3248_v19 = vld [vmem:[#allocation3 + $0x20] ss:$8 sps:$4 sm:$0xff]   ;;  %v2803_v23 = vld [vmem:[#allocation3 + $0x1c4] ss:$8 sps:$4 sm:$0xff]   ;;  %v372_v58 = vshrl.u32 %v371_v57, 7 }
  0x2a   :  { %vm49_vm14 = vmor %vm48_vm13, %vm46_vm12  ;;  %v2805_v24 = vld [vmem:[#allocation3 + $0x1c0] ss:$8 sps:$4 sm:$0xff]   ;;  %v2809_v26 = vld [vmem:[#allocation3 + $0x1d4] ss:$8 sps:$4 sm:$0xff]  }
  0x2b   :  { %709 = vmatpush1.bf16.msra.mxu1 %v2775_v40  ;;  %vm3251_vm3 = vmand %vm421_vm15, %vm45_vm8  ;;  %v2811_v27 = vld [vmem:[#allocation3 + $0x1d0] ss:$8 sps:$4 sm:$0xff]   ;;  %v3274_v29 = vld [vmem:[#allocation3 + $0x44] ss:$8 sps:$4 sm:$0xff]   ;;  %v3348_v59 = vsub.s32 0, %v372_v58 }
  0x2c   :  { %228 = vmatpush1.bf16.msra.mxu0 %v3123_v25  ;;  %710 = vmatprep.subr.bf16.mxu1 %v2776_v41  ;;  %v2817_v32 = vld [vmem:[#allocation3 + $0x1e0] ss:$8 sps:$4 sm:$0xff]   ;;  %v3280_v33 = vld [vmem:[#allocation3 + $0x50] ss:$8 sps:$4 sm:$0xff]   ;;  %v3296_v40 = vld [vmem:[#allocation3 + $0x84] ss:$8 sps:$4 sm:$0xff]  }
  0x2d   :  { %229 = vmatprep.subr.bf16.mxu0 %v3130_v28  ;;  %v2823_v36 = vld [vmem:[#allocation3 + $0x1f0] ss:$8 sps:$4 sm:$0xff]   ;;  %v3286_v37 = vld [vmem:[#allocation3 + $0x60] ss:$8 sps:$4 sm:$0xff]   ;;  %v3320_v48 = vld [vmem:[#allocation3 + $0xc4] ss:$8 sps:$4 sm:$0xff]  }
  0x2e   :  { %v3299_v41 = vld [vmem:[#allocation3 + $0x80] ss:$8 sps:$4 sm:$0xff]   ;;  %v3338_v54 = vld [vmem:[#allocation3 + $0xf4] ss:$8 sps:$4 sm:$0xff]   ;;  %v3341_v55 = vld [vmem:[#allocation3 + $0xf0] ss:$8 sps:$4 sm:$0xff]  }
  0x2f   :  { %711 = vmatpush1.bf16.msra.mxu1 %v2778_v44  ;;  %v3308_v44 = vld [vmem:[#allocation3 + $0xa4] ss:$8 sps:$4 sm:$0xff]   ;;  %v3323_v49 = vld [vmem:[#allocation3 + $0xc0] ss:$8 sps:$4 sm:$0xff]   ;;  %vm3358_vm8 = vmor %vm36_vm4, %vm399_vm7 }
  0x30   :  { %230 = vmatpush1.bf16.msra.mxu0 %v3135_v30  ;;  %712 = vmatprep.subr.bf16.mxu1 %v2779_v45  ;;  %v3311_v45 = vld [vmem:[#allocation3 + $0xa0] ss:$8 sps:$4 sm:$0xff]   ;;  %v3344_v56 = vld [vmem:[#allocation3 + $0x204] ss:$8 sps:$4 sm:$0xff]  }
  0x31   :  { %322 = vmatprep.subr.bf16.mxu0 %v3141_v31  ;;  %v369_v60 = vld [vmem:[%s3515_s2] sm:$0x3]  ;;  %v3433_v57 = vld [vmem:[#allocation3 + $0x224] ss:$8 sps:$4 sm:$0xff]  }
  0x33   :  { %2407 = vmatmul.mubr.msk.bf16.vlgmr.msra.gmra.mrb[0].mxu0 %vm134_vm1, %v3070_v8  ;;  %713 = vmatpush1.bf16.msra.mxu1 %v2781_v47  ;;  %v2790_v8 = vld [vmem:[#allocation3 + $0x190] ss:$8 sps:$4 sm:$0xff]  }
  0x34   :  { %323 = vmatpush1.bf16.msra.mxu0 %v3147_v34  ;;  %354 = vmatprep.mubr.bf16.mxu0 %v2984_v0  ;;  %v3317_v47 = vld [vmem:[#allocation3 + $0xb0] ss:$8 sps:$4 sm:$0xff]  }
  0x35   :  { %324 = vmatprep.subr.bf16.mxu0 %v3152_v35  ;;  %714 = vmatprep.subr.bf16.mxu1 %v2782_v50  ;;  %v3326_v50 = vld [vmem:[#allocation3 + $0xd4] ss:$8 sps:$4 sm:$0xff]  }
  0x37   :  { %715 = vmatpush1.bf16.msra.mxu1 %v2784_v52  ;;  %v3332_v52 = vld [vmem:[#allocation3 + $0xe4] ss:$8 sps:$4 sm:$0xff]  }
  0x38   :  { %325 = vmatpush1.bf16.msra.mxu0 %v3159_v38 }
  0x39   :  { %326 = vmatprep.subr.bf16.mxu0 %v3166_v39 }
  0x3c   :  { %327 = vmatpush1.bf16.msra.mxu0 %v2753_v42 }
  0x3d   :  { %328 = vmatprep.subr.bf16.mxu0 %v2758_v43 }
  0x40   :  { %329 = vmatpush1.bf16.msra.mxu0 %v2756_v46 }
  0x41   :  { %1303 = vmatprep.subr.bf16.mxu0 %v3031_v1  ;;  %v1441_v1 = vsel %vm275_vm2, %v1439_v62, %v1440_v63  ;;  %v374_v62 = vrot.slane %v369_v60, %v3348_v59 }
  0x43   :  { %2424 = vmatmul.mubr.msk.bf16.vlgmr.msra.gmra.mrb[0].mxu0 %vm134_vm1, %v278_v53  ;;  %v3335_v53 = vld [vmem:[#allocation3 + $0xe0] ss:$8 sps:$4 sm:$0xff]  }
  0x44   :  { %1304 = vmatpush1.bf16.msra.mxu0 %v3036_v2  ;;  %1335 = vmatprep.mubr.bf16.mxu0 %v2984_v0  ;;  %v2785_v2 = vld [vmem:[#allocation3 + $0x184] ss:$8 sps:$4 sm:$0xff]  }
  0x45   :  { %1305 = vmatprep.subr.bf16.mxu0 %v3042_v3  ;;  %v2787_v3 = vld [vmem:[#allocation3 + $0x180] ss:$8 sps:$4 sm:$0xff]   ;;  %716 = vmatprep.subr.bf16.mxu1 %v2785_v2 }
  0x46   :  { %717 = vmatpush1.bf16.msra.mxu1 %v2787_v3 }
  0x48   :  { %1306 = vmatpush1.bf16.msra.mxu0 %v3048_v4  ;;  %v42_v4 = vld [vmem:[#allocation2] sm:$0x11] }
  0x49   :  { %1307 = vmatprep.subr.bf16.mxu0 %v3054_v5  ;;  %v50_v5 = vld [vmem:[#allocation2 + $0x10] sm:$0x11]  ;;  %v43_v10 = vsel %vm3227_vm11, 0, %v42_v4 }
  0x4a   :  { %44 = vst [vmem:[#allocation2] sm:$0x11] %v43_v10 }
  0x4c   :  { %1308 = vmatpush1.bf16.msra.mxu0 %v3059_v6  ;;  %v2788_v6 = vld [vmem:[#allocation3 + $0x194] ss:$8 sps:$4 sm:$0xff]  }
  0x4d   :  { %1309 = vmatprep.subr.bf16.mxu0 %v3064_v7  ;;  %718 = vmatprep.subr.bf16.mxu1 %v2788_v6  ;;  %v3428_v7 = vld [vmem:[#allocation3 + $0x210] ss:$8 sps:$4 sm:$0xff]  }
  0x4e   :  { %719 = vmatpush1.bf16.msra.mxu1 %v2790_v8 }
  0x4f   :  { %720 = vmatprep.subr.bf16.mxu1 %v2791_v11 }
  0x50   :  { %1310 = vmatpush1.bf16.msra.mxu0 %v3085_v13  ;;  %v2793_v13 = vld [vmem:[#allocation3 + $0x1a0] ss:$8 sps:$4 sm:$0xff]  }
  0x51   :  { %1388 = vmatprep.subr.bf16.mxu0 %v3091_v15  ;;  %v51_v15 = vsel %vm49_vm14, 0, %v50_v5 }
  0x52   :  { %52 = vst [vmem:[#allocation2 + $0x10] sm:$0x11] %v51_v15  ;;  %721 = vmatpush1.bf16.msra.mxu1 %v2793_v13 }
  0x53   :  { %2548 = vmatmul.mubr.msk.bf16.vlgmr.msra.gmra.mrb[4].mxu0 %vm134_vm1, %v1259_v61  ;;  %722 = vmatprep.subr.bf16.mxu1 %v2797_v17  ;;  %v3353_v61 = vsub.s32 1, %v372_v58 }
  0x54   :  { %1389 = vmatpush1.bf16.msra.mxu0 %v3097_v18  ;;  %1420 = vmatprep.mubr.bf16.mxu0 %v2984_v0  ;;  %v2799_v18 = vld [vmem:[#allocation3 + $0x1b0] ss:$8 sps:$4 sm:$0xff]  }
  0x55   :  { %1390 = vmatprep.subr.bf16.mxu0 %v3104_v20  ;;  %v378_v63 = vrot.slane %v369_v60, %v3353_v61 }
  0x56   :  { %723 = vmatpush1.bf16.msra.mxu1 %v2799_v18 }
  0x57   :  { %724 = vmatprep.subr.bf16.mxu1 %v2803_v23 }
  0x58   :  { %1391 = vmatpush1.bf16.msra.mxu0 %v3111_v21 }
  0x59   :  { %1392 = vmatprep.subr.bf16.mxu0 %v3116_v22  ;;  %v3261_v22 = vld [vmem:[#allocation3 + $0x34] ss:$8 sps:$4 sm:$0xff]  }
  0x5a   :  { %725 = vmatpush1.bf16.msra.mxu1 %v2805_v24  ;;  %v430_v58 = vld [vmem:[#allocation2 + $0x10] sm:$0x11] }
  0x5b   :  { %726 = vmatprep.subr.bf16.mxu1 %v2809_v26 }
  0x5c   :  { %1393 = vmatpush1.bf16.msra.mxu0 %v3123_v25  ;;  %v3268_v25 = vld [vmem:[#allocation3 + $0x30] ss:$8 sps:$4 sm:$0xff]  }
  0x5d   :  { %1394 = vmatprep.subr.bf16.mxu0 %v3130_v28  ;;  %v3272_v28 = vld [vmem:[#allocation3 + $0x40] ss:$8 sps:$4 sm:$0xff]  }
  0x5e   :  { %727 = vmatpush1.bf16.msra.mxu1 %v2811_v27 }
  0x60   :  { %1395 = vmatpush1.bf16.msra.mxu0 %v3135_v30  ;;  %v2815_v30 = vld [vmem:[#allocation3 + $0x1e4] ss:$8 sps:$4 sm:$0xff]  }
  0x61   :  { %1485 = vmatprep.subr.bf16.mxu0 %v3141_v31  ;;  %v3276_v31 = vld [vmem:[#allocation3 + $0x54] ss:$8 sps:$4 sm:$0xff]   ;;  %728 = vmatprep.subr.bf16.mxu1 %v2815_v30  ;;  %v426_v30 = vld [vmem:[#allocation2] sm:$0xff] }
  0x62   :  { %729 = vmatpush1.bf16.msra.mxu1 %v2817_v32 }
  0x63   :  { %2557 = vmatmul.mubr.msk.bf16.vlgmr.msra.gmra.mrb[4].mxu0 %vm134_vm1, %v2759_v51  ;;  %v3329_v51 = vld [vmem:[#allocation3 + $0xd0] ss:$8 sps:$4 sm:$0xff]  }
  0x64   :  { %1486 = vmatpush1.bf16.msra.mxu0 %v3147_v34  ;;  %1517 = vmatprep.mubr.bf16.mxu0 %v2984_v0  ;;  %v3221_v0 = vld [vmem:[#allocation3 + $0x4] ss:$8 sps:$4 sm:$0xff]   ;;  %v2821_v34 = vld [vmem:[#allocation3 + $0x1f4] ss:$8 sps:$4 sm:$0xff]  }
  0x65   :  { %1487 = vmatprep.subr.bf16.mxu0 %v3152_v35  ;;  %v3283_v35 = vld [vmem:[#allocation3 + $0x64] ss:$8 sps:$4 sm:$0xff]   ;;  %730 = vmatprep.subr.bf16.mxu1 %v2821_v34 }
  0x66   :  { %731 = vmatpush1.bf16.msra.mxu1 %v2823_v36 }
  0x67   :  { %905 = vmatprep.subr.bf16.mxu1 %v3221_v0 }
  0x68   :  { %1488 = vmatpush1.bf16.msra.mxu0 %v3159_v38  ;;  %v3289_v38 = vld [vmem:[#allocation3 + $0x74] ss:$8 sps:$4 sm:$0xff]  }
  0x69   :  { %1489 = vmatprep.subr.bf16.mxu0 %v3166_v39  ;;  %v3292_v39 = vld [vmem:[#allocation3 + $0x70] ss:$8 sps:$4 sm:$0xff]  }
  0x6c   :  { %1490 = vmatpush1.bf16.msra.mxu0 %v2753_v42  ;;  %v3302_v42 = vld [vmem:[#allocation3 + $0x94] ss:$8 sps:$4 sm:$0xff]  }
  0x6d   :  { %1491 = vmatprep.subr.bf16.mxu0 %v2758_v43  ;;  %v3305_v43 = vld [vmem:[#allocation3 + $0x90] ss:$8 sps:$4 sm:$0xff]  }
  0x70   :  { %1492 = vmatpush1.bf16.msra.mxu0 %v2756_v46  ;;  %v3314_v46 = vld [vmem:[#allocation3 + $0xb4] ss:$8 sps:$4 sm:$0xff]  }
  0x71   :  { %2060 = vmatprep.subr.bf16.mxu0 %v3221_v0 }
  0x73   :  { %2574 = vmatmul.mubr.msk.bf16.vlgmr.msra.gmra.mrb[4].mxu0 %vm134_vm1, %v1441_v1  ;;  %vm423_vm1 = vcmask 1047556  }
  0x74   :  { %2061 = vmatpush1.bf16.msra.mxu0 %v3231_v9  ;;  %vm3257_vm5 = vmand %vm423_vm1, %vm47_vm10 }
  0x75   :  { %2062 = vmatprep.subr.bf16.mxu0 %v3242_v14  ;;  %vm425_vm6 = vmor %vm3257_vm5, %vm3251_vm3 }
  0x78   :  { %2063 = vmatpush1.bf16.msra.mxu0 %v3237_v12 }
  0x79   :  { %2064 = vmatprep.subr.bf16.mxu0 %v3245_v16 }
  0x7c   :  { %2065 = vmatpush1.bf16.msra.mxu0 %v3248_v19 }
  0x7d   :  { %2066 = vmatprep.subr.bf16.mxu0 %v3261_v22 }
  0x80   :  { %2067 = vmatpush1.bf16.msra.mxu0 %v3268_v25 }
  0x81   :  { %2068 = vmatprep.subr.bf16.mxu0 %v3274_v29 }
  0x84   :  { %2069 = vmatpush1.bf16.msra.mxu0 %v3272_v28 }
  0x85   :  { %2070 = vmatprep.subr.bf16.mxu0 %v3276_v31 }
  0x88   :  { %2071 = vmatpush1.bf16.msra.mxu0 %v3280_v33 }
  0x89   :  { %2072 = vmatprep.subr.bf16.mxu0 %v3283_v35 }
  0x8c   :  { %2073 = vmatpush1.bf16.msra.mxu0 %v3286_v37 }
  0x8d   :  { %2074 = vmatprep.subr.bf16.mxu0 %v3289_v38 }
  0x90   :  { %2075 = vmatpush1.bf16.msra.mxu0 %v3292_v39 }
  0x91   :  { %2076 = vmatprep.subr.bf16.mxu0 %v3296_v40 }
  0x94   :  { %2077 = vmatpush1.bf16.msra.mxu0 %v3299_v41 }
  0x95   :  { %2078 = vmatprep.subr.bf16.mxu0 %v3302_v42 }
  0x98   :  { %2079 = vmatpush1.bf16.msra.mxu0 %v3305_v43 }
  0x99   :  { %2080 = vmatprep.subr.bf16.mxu0 %v3308_v44 }
  0x9c   :  { %2081 = vmatpush1.bf16.msra.mxu0 %v3311_v45 }
  0x9d   :  { %2082 = vmatprep.subr.bf16.mxu0 %v3314_v46 }
  0xa0   :  { %2083 = vmatpush1.bf16.msra.mxu0 %v3317_v47 }
  0xa1   :  { %2084 = vmatprep.subr.bf16.mxu0 %v3320_v48 }
  0xa4   :  { %2085 = vmatpush1.bf16.msra.mxu0 %v3323_v49 }
  0xa5   :  { %2086 = vmatprep.subr.bf16.mxu0 %v3326_v50 }
  0xa8   :  { %2087 = vmatpush1.bf16.msra.mxu0 %v3329_v51 }
  0xa9   :  { %2088 = vmatprep.subr.bf16.mxu0 %v3332_v52 }
  0xac   :  { %2089 = vmatpush1.bf16.msra.mxu0 %v3335_v53 }
  0xad   :  { %2090 = vmatprep.subr.bf16.mxu0 %v3338_v54 }
  0xb0   :  { %2091 = vmatpush1.bf16.msra.mxu0 %v3341_v55 }
  0xb1   :  { %2303 = vmatprep.subr.bf16.mxu0 %v3344_v56 }
 0x116   :  { %v356_v1 = vpop.f32.mrb[0].mxu0 }
 0x117   :  { %v381_v2 = vadd.f32 %v374_v62, %v356_v1  ;;  %v358_v3 = vpop.f32.mrb[1].mxu0 }
 0x118   :  { %v382_v0 = vadd.f32 %v378_v63, %v358_v3  ;;  %v360_v4 = vpop.f32.mrb[2].mxu0 }
 0x119   :  { %v385_v5 = vmax.f32 %v381_v2, 0.0  ;;  %v383_v6 = vadd.f32 %v374_v62, %v360_v4  ;;  %v362_v8 = vpop.f32.mrb[3].mxu0 }
 0x11a   :  { %v386_v10 = vmax.f32 %v382_v0, 0.0  ;;  %v384_v11 = vadd.f32 %v378_v63, %v362_v8 }
 0x11b   :  { %v387_v13 = vmax.f32 %v383_v6, 0.0 }
 0x11c   :  { %v2681_v15 = vpack.c.bf16 %v386_v10, %v385_v5  ;;  %v388_v17 = vmax.f32 %v384_v11, 0.0 }
 0x11e   :  { %v402_v18 = vshrl.u32 %v2681_v15, 16  ;;  %v2682_v23 = vpack.c.bf16 %v388_v17, %v387_v13  ;;  %v405_v26 = vshll.u32 %v2681_v15, 16 }
 0x120   :  { %v404_v24 = vrot.slane %v402_v18, 7  ;;  %v410_v27 = vshrl.u32 %v2682_v23, 16  ;;  %v413_v36 = vshll.u32 %v2682_v23, 16 }
 0x122   :  { %v407_v32 = vor.u32 %v405_v26, %v404_v24  ;;  %v412_v34 = vrot.slane %v410_v27, 7  ;;  %v408_v60 = vrot.slane %v404_v24, 4 }
 0x124   :  { %v3367_v62 = vsel %vm425_vm6, %v407_v32, %v426_v30  ;;  %v415_v63 = vor.u32 %v413_v36, %v412_v34  ;;  %v417_v1 = vrot.slane %v412_v34, 4 }
 0x126   :  { %v416_v2 = vsel %vm3358_vm8, %v408_v60, %v415_v63  ;;  %v431_v3 = vsel %vm3227_vm11, %v417_v1, %v430_v58  ;;  %v1532_v1 = vld [vmem:[%s3515_s2] sm:$0x3] }
 0x127   :  { %432 = vst [vmem:[#allocation2 + $0x10] sm:$0x11] %v431_v3  ;;  %v2428_v0 = vcombine.high %v3367_v62, %v416_v2  ;;  %v3375_v4 = vcombine.low %v3367_v62, %v416_v2  ;;  %v1537_v2 = vrot.slane %v1532_v1, %v3348_v59 }
 0x129   :  { %v529_v5 = vshll.u32 %v2428_v0, 16  ;;  %v517_v6 = vshll.u32 %v3375_v4, 16  ;;  %v527_v17 = vshrl.u32 %v2428_v0, 16  ;;  %v515_v18 = vshrl.u32 %v3375_v4, 16 }
 0x12a   :  { %v984_v26 = vrot.slane %v2428_v0, 1 }
 0x12b   :  { %v531_v10 = vrot.slane %v529_v5, 1  ;;  %v519_v15 = vrot.slane %v517_v6, 1 }
 0x12d   :  { %v532_v30 = vor.u32 %v531_v10, %v527_v17  ;;  %v520_v34 = vor.u32 %v519_v15, %v515_v18 }
 0x12e   :  { %v435_v8 = vld [vmem:[#allocation2 + $0x10] sm:$0x11] }
 0x12f   :  { %v2430_v11 = vcombine.high %v435_v8, %v435_v8  ;;  %v3378_v13 = vcombine.low %v435_v8, %v435_v8 }
 0x131   :  { %v534_v23 = vshll.u32 %v2430_v11, 16  ;;  %v522_v24 = vshll.u32 %v3378_v13, 16  ;;  %v985_v27 = vrot.slane %v2430_v11, 1 }
 0x133   :  { %v536_v32 = vrot.slane %v534_v23, 1  ;;  %v524_v36 = vrot.slane %v522_v24, 1  ;;  %v3383_v58 = vsel %vm275_vm2, %v984_v26, %v985_v27 }
 0x135   :  { %v537_v60 = vsel %vm81_vm0, %v532_v30, %v536_v32  ;;  %v525_v63 = vsel %vm81_vm0, %v520_v34, %v524_v36  ;;  %v1586_v30 = vld [vmem:[#allocation2 + $0x10] sm:$0x11]  ;;  %v3418_v32 = vld [vmem:[#allocation3 + $0x200] ss:$8 sps:$4 sm:$0xff]  }
 0x136   :  { %732 = vmatprep.mubr.bf16.mxu1 %v537_v60  ;;  %v3437_v36 = vld [vmem:[#allocation3 + $0x220] ss:$8 sps:$4 sm:$0xff]  }
 0x137   :  { %733 = vmatmul.mubr.bf16.vlgmr.msra.gmra.mrb[0].mxu1 %v525_v63 }
 0x138   :  { %906 = vmatpush1.bf16.msra.mxu1 %v3231_v9  ;;  %937 = vmatprep.mubr.bf16.mxu1 %v2428_v0  ;;  %v1541_v9 = vrot.slane %v1532_v1, %v3353_v61 }
 0x139   :  { %907 = vmatprep.subr.bf16.mxu1 %v3242_v14 }
 0x13c   :  { %908 = vmatpush1.bf16.msra.mxu1 %v3237_v12 }
 0x13d   :  { %909 = vmatprep.subr.bf16.mxu1 %v3245_v16 }
 0x140   :  { %910 = vmatpush1.bf16.msra.mxu1 %v3248_v19 }
 0x141   :  { %911 = vmatprep.subr.bf16.mxu1 %v3261_v22 }
 0x144   :  { %912 = vmatpush1.bf16.msra.mxu1 %v3268_v25 }
 0x145   :  { %913 = vmatprep.subr.bf16.mxu1 %v3274_v29 }
 0x146   :  { %v1519_v14 = vpop.f32.mrb[4].mxu0 }
 0x147   :  { %v1544_v12 = vadd.f32 %v1537_v2, %v1519_v14  ;;  %v1521_v3 = vpop.f32.mrb[5].mxu0 }
 0x148   :  { %v1545_v16 = vadd.f32 %v1541_v9, %v1521_v3  ;;  %v1523_v0 = vpop.f32.mrb[6].mxu0  ;;  %914 = vmatpush1.bf16.msra.mxu1 %v3272_v28 }
 0x149   :  { %v1548_v19 = vmax.f32 %v1544_v12, 0.0  ;;  %v1546_v5 = vadd.f32 %v1537_v2, %v1523_v0  ;;  %v1525_v6 = vpop.f32.mrb[7].mxu0  ;;  %915 = vmatprep.subr.bf16.mxu1 %v3276_v31  ;;  %v2869_v0 = vld [vmem:[#allocation3 + $0x230] ss:$8 sps:$4 sm:$0xff]  }
 0x14a   :  { %v1549_v22 = vmax.f32 %v1545_v16, 0.0  ;;  %v1547_v8 = vadd.f32 %v1541_v9, %v1525_v6 }
 0x14b   :  { %v1550_v10 = vmax.f32 %v1546_v5, 0.0 }
 0x14c   :  { %v2683_v25 = vpack.c.bf16 %v1549_v22, %v1548_v19  ;;  %v1551_v11 = vmax.f32 %v1547_v8, 0.0  ;;  %916 = vmatpush1.bf16.msra.mxu1 %v3280_v33  ;;  %v2872_v8 = vld [vmem:[#allocation3 + $0x240] ss:$8 sps:$4 sm:$0xff]  }
 0x14d   :  { %917 = vmatprep.subr.bf16.mxu1 %v3283_v35 }
 0x14e   :  { %v1563_v29 = vshrl.u32 %v2683_v25, 16  ;;  %v1566_v15 = vshll.u32 %v2683_v25, 16  ;;  %v2684_v17 = vpack.c.bf16 %v1551_v11, %v1550_v10  ;;  %v2877_v10 = vld [vmem:[#allocation3 + $0x254] ss:$8 sps:$4 sm:$0xff]   ;;  %v2878_v25 = vld [vmem:[#allocation3 + $0x260] ss:$8 sps:$4 sm:$0xff]  }
 0x14f   :  { %v2883_v11 = vld [vmem:[#allocation3 + $0x274] ss:$8 sps:$4 sm:$0xff]  }
 0x150   :  { %v1565_v18 = vrot.slane %v1563_v29, 7  ;;  %v1571_v23 = vshrl.u32 %v2684_v17, 16  ;;  %v1574_v28 = vshll.u32 %v2684_v17, 16  ;;  %918 = vmatpush1.bf16.msra.mxu1 %v3286_v37  ;;  %v2898_v29 = vld [vmem:[#allocation3 + $0x2c4] ss:$8 sps:$4 sm:$0xff]  }
 0x151   :  { %919 = vmatprep.subr.bf16.mxu1 %v3289_v38  ;;  %v2901_v17 = vld [vmem:[#allocation3 + $0x2d4] ss:$8 sps:$4 sm:$0xff]  }
 0x152   :  { %v1568_v31 = vor.u32 %v1566_v15, %v1565_v18  ;;  %v1569_v24 = vrot.slane %v1565_v18, 4  ;;  %v1573_v26 = vrot.slane %v1571_v23, 7  ;;  %v2896_v15 = vld [vmem:[#allocation3 + $0x2c0] ss:$8 sps:$4 sm:$0xff]   ;;  %v2899_v18 = vld [vmem:[#allocation3 + $0x2d0] ss:$8 sps:$4 sm:$0xff]  }
 0x153   :  { %v2904_v23 = vld [vmem:[#allocation3 + $0x2e4] ss:$8 sps:$4 sm:$0xff]  }
 0x154   :  { %v1583_v33 = vsel %vm425_vm6, %v1568_v31, %v3367_v62  ;;  %v1576_v35 = vor.u32 %v1574_v28, %v1573_v26  ;;  %v1578_v27 = vrot.slane %v1573_v26, 4  ;;  %920 = vmatpush1.bf16.msra.mxu1 %v3292_v39  ;;  %v3423_v62 = vld [vmem:[#allocation3 + $0x214] ss:$8 sps:$4 sm:$0xff]   ;;  %v2902_v28 = vld [vmem:[#allocation3 + $0x2e0] ss:$8 sps:$4 sm:$0xff]  }
 0x155   :  { %1584 = vst [vmem:[#allocation2] sm:$0xff] %v1583_v33  ;;  %921 = vmatprep.subr.bf16.mxu1 %v3296_v40  ;;  %v2907_v31 = vld [vmem:[#allocation3 + $0x2f4] ss:$8 sps:$4 sm:$0xff]  }
 0x156   :  { %v1577_v37 = vsel %vm3358_vm8, %v1569_v24, %v1576_v35  ;;  %v1587_v38 = vsel %vm3227_vm11, %v1578_v27, %v1586_v30  ;;  %v2905_v24 = vld [vmem:[#allocation3 + $0x2f0] ss:$8 sps:$4 sm:$0xff]   ;;  %v2911_v27 = vld [vmem:[#allocation3 + $0x104] ss:$8 sps:$4 sm:$0xff]   ;;  %v982_v30 = vrot.slane %v3378_v13, 1 }
 0x157   :  { %1588 = vst [vmem:[#allocation2 + $0x10] sm:$0x11] %v1587_v38  ;;  %v2578_v21 = vcombine.high %v1583_v33, %v1577_v37  ;;  %v3420_v20 = vcombine.low %v1583_v33, %v1577_v37  ;;  %v981_v37 = vrot.slane %v3375_v4, 1  ;;  %v2909_v38 = vld [vmem:[#allocation3 + $0x100] ss:$8 sps:$4 sm:$0xff]  }
 0x158   :  { %922 = vmatpush1.bf16.msra.mxu1 %v3299_v41  ;;  %v2918_v13 = vld [vmem:[#allocation3 + $0x130] ss:$8 sps:$4 sm:$0xff]  }
 0x159   :  { %923 = vmatprep.subr.bf16.mxu1 %v3302_v42  ;;  %2092 = vmatprep.mubr.bf16.mxu0 %v2578_v21  ;;  %v1684_v39 = vshll.u32 %v2578_v21, 16  ;;  %v1672_v40 = vshll.u32 %v3420_v20, 16  ;;  %v2138_v1 = vrot.slane %v2578_v21, 1  ;;  %v1670_v14 = vshrl.u32 %v3420_v20, 16 }
 0x15a   :  { %2093 = vmatmul.mubr.bf16.vlgmr.msra.gmra.mrb[8].mxu0 %v3420_v20  ;;  %v2135_v33 = vrot.slane %v3420_v20, 1  ;;  %v2912_v20 = vld [vmem:[#allocation3 + $0x110] ss:$8 sps:$4 sm:$0xff]  }
 0x15b   :  { %2304 = vmatpush1.bf16.msra.mxu0 %v3418_v32  ;;  %v1686_v42 = vrot.slane %v1684_v39, 1  ;;  %v1674_v63 = vrot.slane %v1672_v40, 1  ;;  %v2915_v39 = vld [vmem:[#allocation3 + $0x120] ss:$8 sps:$4 sm:$0xff]  }
 0x15c   :  { %924 = vmatpush1.bf16.msra.mxu1 %v3305_v43  ;;  %2305 = vmatprep.subr.bf16.mxu0 %v3423_v62  ;;  %v1682_v43 = vshrl.u32 %v2578_v21, 16  ;;  %v2914_v21 = vld [vmem:[#allocation3 + $0x114] ss:$8 sps:$4 sm:$0xff]   ;;  %v2921_v40 = vld [vmem:[#allocation3 + $0x140] ss:$8 sps:$4 sm:$0xff]  }
 0x15d   :  { %925 = vmatprep.subr.bf16.mxu1 %v3308_v44  ;;  %v2871_v44 = vld [vmem:[#allocation3 + $0x234] ss:$8 sps:$4 sm:$0xff]   ;;  %v1675_v19 = vor.u32 %v1674_v63, %v1670_v14  ;;  %v2935_v63 = vld [vmem:[#allocation3 + $0x184] ss:$8 sps:$4 sm:$0xff]  }
 0x15e   :  { %v1591_v41 = vld [vmem:[#allocation2 + $0x10] sm:$0x11]  ;;  %v1687_v3 = vor.u32 %v1686_v42, %v1682_v43  ;;  %v2929_v42 = vld [vmem:[#allocation3 + $0x164] ss:$8 sps:$4 sm:$0xff]  }
 0x15f   :  { %v2580_v34 = vcombine.high %v1591_v41, %v1591_v41  ;;  %2306 = vmatpush1.bf16.msra.mxu0 %v3428_v7  ;;  %v3439_v60 = vcombine.low %v1591_v41, %v1591_v41  ;;  %v2924_v41 = vld [vmem:[#allocation3 + $0x150] ss:$8 sps:$4 sm:$0xff]   ;;  %v2938_v43 = vld [vmem:[#allocation3 + $0x194] ss:$8 sps:$4 sm:$0xff]  }
 0x160   :  { %926 = vmatpush1.bf16.msra.mxu1 %v3311_v45  ;;  %2307 = vmatprep.subr.bf16.mxu0 %v3433_v57  ;;  %v2944_v14 = vld [vmem:[#allocation3 + $0x1b4] ss:$8 sps:$4 sm:$0xff]  }
 0x161   :  { %927 = vmatprep.subr.bf16.mxu1 %v3314_v46  ;;  %v2139_v2 = vrot.slane %v2580_v34, 1  ;;  %v1689_v9 = vshll.u32 %v2580_v34, 16  ;;  %v1677_v12 = vshll.u32 %v3439_v60, 16  ;;  %v2874_v46 = vld [vmem:[#allocation3 + $0x244] ss:$8 sps:$4 sm:$0xff]   ;;  %v2136_v26 = vrot.slane %v3439_v60, 1 }
 0x162   :  { %v2927_v34 = vld [vmem:[#allocation3 + $0x160] ss:$8 sps:$4 sm:$0xff]   ;;  %v2930_v60 = vld [vmem:[#allocation3 + $0x170] ss:$8 sps:$4 sm:$0xff]  }
 0x163   :  { %v2140_v16 = vsel %vm275_vm2, %v2138_v1, %v2139_v2  ;;  %2308 = vmatpush1.bf16.msra.mxu0 %v3437_v36  ;;  %v1691_v45 = vrot.slane %v1689_v9, 1  ;;  %v1679_v5 = vrot.slane %v1677_v12, 1  ;;  %v2137_v35 = vsel %vm275_vm2, %v2135_v33, %v2136_v26  ;;  %v2933_v1 = vld [vmem:[#allocation3 + $0x180] ss:$8 sps:$4 sm:$0xff]   ;;  %v2936_v2 = vld [vmem:[#allocation3 + $0x190] ss:$8 sps:$4 sm:$0xff]  }
 0x164   :  { %2335 = vmatprep.mubr.bf16.mxu0 %v2140_v16  ;;  %928 = vmatpush1.bf16.msra.mxu1 %v3317_v47  ;;  %v2875_v47 = vld [vmem:[#allocation3 + $0x250] ss:$8 sps:$4 sm:$0xff]   ;;  %v2939_v9 = vld [vmem:[#allocation3 + $0x1a0] ss:$8 sps:$4 sm:$0xff]  }
 0x165   :  { %929 = vmatprep.subr.bf16.mxu1 %v3320_v48  ;;  %2309 = vmatprep.subr.bf16.mxu0 %v2871_v44  ;;  %v3451_v6 = vsel %vm81_vm0, %v1687_v3, %v1691_v45  ;;  %v3454_v22 = vsel %vm81_vm0, %v1675_v19, %v1679_v5  ;;  %v2880_v48 = vld [vmem:[#allocation3 + $0x264] ss:$8 sps:$4 sm:$0xff]   ;;  %v2942_v12 = vld [vmem:[#allocation3 + $0x1b0] ss:$8 sps:$4 sm:$0xff]   ;;  %v2945_v16 = vld [vmem:[#allocation3 + $0x1c0] ss:$8 sps:$4 sm:$0xff]  }
 0x166   :  { %v2947_v3 = vld [vmem:[#allocation3 + $0x1c4] ss:$8 sps:$4 sm:$0xff]   ;;  %v2948_v45 = vld [vmem:[#allocation3 + $0x1d0] ss:$8 sps:$4 sm:$0xff]   ;;  %v2951_v5 = vld [vmem:[#allocation3 + $0x1e0] ss:$8 sps:$4 sm:$0xff]  }
 0x167   :  { %2310 = vmatpush1.bf16.msra.mxu0 %v2869_v0  ;;  %v2953_v19 = vld [vmem:[#allocation3 + $0x1e4] ss:$8 sps:$4 sm:$0xff]  }
 0x168   :  { %930 = vmatpush1.bf16.msra.mxu1 %v3323_v49  ;;  %2311 = vmatprep.subr.bf16.mxu0 %v2874_v46  ;;  %v2881_v49 = vld [vmem:[#allocation3 + $0x270] ss:$8 sps:$4 sm:$0xff]  }
 0x169   :  { %931 = vmatprep.subr.bf16.mxu1 %v3326_v50  ;;  %v2886_v50 = vld [vmem:[#allocation3 + $0x284] ss:$8 sps:$4 sm:$0xff]  }
 0x16b   :  { %2312 = vmatpush1.bf16.msra.mxu0 %v2872_v8 }
 0x16c   :  { %932 = vmatpush1.bf16.msra.mxu1 %v3329_v51  ;;  %2313 = vmatprep.subr.bf16.mxu0 %v2877_v10  ;;  %v2884_v51 = vld [vmem:[#allocation3 + $0x280] ss:$8 sps:$4 sm:$0xff]  }
 0x16d   :  { %933 = vmatprep.subr.bf16.mxu1 %v3332_v52  ;;  %v2889_v52 = vld [vmem:[#allocation3 + $0x294] ss:$8 sps:$4 sm:$0xff]  }
 0x16f   :  { %2314 = vmatpush1.bf16.msra.mxu0 %v2875_v47 }
 0x170   :  { %934 = vmatpush1.bf16.msra.mxu1 %v3335_v53  ;;  %2315 = vmatprep.subr.bf16.mxu0 %v2880_v48  ;;  %v2887_v53 = vld [vmem:[#allocation3 + $0x290] ss:$8 sps:$4 sm:$0xff]  }
 0x171   :  { %935 = vmatprep.subr.bf16.mxu1 %v3338_v54  ;;  %v2892_v54 = vld [vmem:[#allocation3 + $0x2a4] ss:$8 sps:$4 sm:$0xff]  }
 0x173   :  { %2316 = vmatpush1.bf16.msra.mxu0 %v2878_v25 }
 0x174   :  { %936 = vmatpush1.bf16.msra.mxu1 %v3341_v55  ;;  %2317 = vmatprep.subr.bf16.mxu0 %v2883_v11  ;;  %v2890_v55 = vld [vmem:[#allocation3 + $0x2a0] ss:$8 sps:$4 sm:$0xff]  }
 0x175   :  { %1149 = vmatprep.subr.bf16.mxu1 %v3344_v56  ;;  %v2895_v56 = vld [vmem:[#allocation3 + $0x2b4] ss:$8 sps:$4 sm:$0xff]  }
 0x177   :  { %938 = vmatmul.mubr.bf16.vlgmr.msra.gmra.mrb[0].mxu1 %v3375_v4  ;;  %2318 = vmatpush1.bf16.msra.mxu0 %v2881_v49  ;;  %v2923_v4 = vld [vmem:[#allocation3 + $0x144] ss:$8 sps:$4 sm:$0xff]  }
 0x178   :  { %1150 = vmatpush1.bf16.msra.mxu1 %v3418_v32  ;;  %1181 = vmatprep.mubr.bf16.mxu1 %v3383_v58  ;;  %v2893_v58 = vld [vmem:[#allocation3 + $0x2b0] ss:$8 sps:$4 sm:$0xff]   ;;  %v983_v32 = vsel %vm275_vm2, %v981_v37, %v982_v30 }
 0x179   :  { %1151 = vmatprep.subr.bf16.mxu1 %v3423_v62  ;;  %2319 = vmatprep.subr.bf16.mxu0 %v2886_v50  ;;  %v2917_v62 = vld [vmem:[#allocation3 + $0x124] ss:$8 sps:$4 sm:$0xff]  }
 0x17b   :  { %2320 = vmatpush1.bf16.msra.mxu0 %v2884_v51 }
 0x17c   :  { %1152 = vmatpush1.bf16.msra.mxu1 %v3428_v7  ;;  %2321 = vmatprep.subr.bf16.mxu0 %v2889_v52  ;;  %v2920_v7 = vld [vmem:[#allocation3 + $0x134] ss:$8 sps:$4 sm:$0xff]  }
 0x17d   :  { %1153 = vmatprep.subr.bf16.mxu1 %v3433_v57  ;;  %v2926_v57 = vld [vmem:[#allocation3 + $0x154] ss:$8 sps:$4 sm:$0xff]  }
 0x17f   :  { %2322 = vmatpush1.bf16.msra.mxu0 %v2887_v53 }
 0x180   :  { %1154 = vmatpush1.bf16.msra.mxu1 %v3437_v36  ;;  %2323 = vmatprep.subr.bf16.mxu0 %v2892_v54  ;;  %v2932_v36 = vld [vmem:[#allocation3 + $0x174] ss:$8 sps:$4 sm:$0xff]  }
 0x181   :  { %1155 = vmatprep.subr.bf16.mxu1 %v2871_v44  ;;  %v2941_v44 = vld [vmem:[#allocation3 + $0x1a4] ss:$8 sps:$4 sm:$0xff]  }
 0x183   :  { %2324 = vmatpush1.bf16.msra.mxu0 %v2890_v55 }
 0x184   :  { %1156 = vmatpush1.bf16.msra.mxu1 %v2869_v0  ;;  %2325 = vmatprep.subr.bf16.mxu0 %v2895_v56  ;;  %v2950_v0 = vld [vmem:[#allocation3 + $0x1d4] ss:$8 sps:$4 sm:$0xff]  }
 0x185   :  { %1157 = vmatprep.subr.bf16.mxu1 %v2874_v46  ;;  %v2956_v46 = vld [vmem:[#allocation3 + $0x1f4] ss:$8 sps:$4 sm:$0xff]  }
 0x187   :  { %2326 = vmatpush1.bf16.msra.mxu0 %v2893_v58 }
 0x188   :  { %1158 = vmatpush1.bf16.msra.mxu1 %v2872_v8  ;;  %2327 = vmatprep.subr.bf16.mxu0 %v2898_v29 }
 0x189   :  { %1159 = vmatprep.subr.bf16.mxu1 %v2877_v10 }
 0x18b   :  { %2328 = vmatpush1.bf16.msra.mxu0 %v2896_v15 }
 0x18c   :  { %1160 = vmatpush1.bf16.msra.mxu1 %v2875_v47  ;;  %2329 = vmatprep.subr.bf16.mxu0 %v2901_v17 }
 0x18d   :  { %1161 = vmatprep.subr.bf16.mxu1 %v2880_v48 }
 0x18f   :  { %2330 = vmatpush1.bf16.msra.mxu0 %v2899_v18 }
 0x190   :  { %1162 = vmatpush1.bf16.msra.mxu1 %v2878_v25  ;;  %2331 = vmatprep.subr.bf16.mxu0 %v2904_v23  ;;  %v1196_v25 = vld [vmem:[%s3517_s4] sm:$0x3] }
 0x191   :  { %1163 = vmatprep.subr.bf16.mxu1 %v2883_v11  ;;  %v1201_v11 = vrot.slane %v1196_v25, %v3348_v59 }
 0x193   :  { %2332 = vmatpush1.bf16.msra.mxu0 %v2902_v28 }
 0x194   :  { %1164 = vmatpush1.bf16.msra.mxu1 %v2881_v49  ;;  %2333 = vmatprep.subr.bf16.mxu0 %v2907_v31  ;;  %v1205_v49 = vrot.slane %v1196_v25, %v3353_v61 }
 0x195   :  { %1165 = vmatprep.subr.bf16.mxu1 %v2886_v50 }
 0x197   :  { %2334 = vmatpush1.bf16.msra.mxu0 %v2905_v24 }
 0x198   :  { %1166 = vmatpush1.bf16.msra.mxu1 %v2884_v51 }
 0x199   :  { %1167 = vmatprep.subr.bf16.mxu1 %v2889_v52 }
 0x19a   :  { %2336 = vmatmul.mubr.bf16.vlgmr.msra.gmra.mrb[8].mxu0 %v2137_v35 }
 0x19c   :  { %1168 = vmatpush1.bf16.msra.mxu1 %v2887_v53 }
 0x19d   :  { %1169 = vmatprep.subr.bf16.mxu1 %v2892_v54 }
 0x1a0   :  { %1170 = vmatpush1.bf16.msra.mxu1 %v2890_v55 }
 0x1a1   :  { %1171 = vmatprep.subr.bf16.mxu1 %v2895_v56 }
 0x1a4   :  { %1172 = vmatpush1.bf16.msra.mxu1 %v2893_v58 }
 0x1a5   :  { %1173 = vmatprep.subr.bf16.mxu1 %v2898_v29 }
 0x1a8   :  { %1174 = vmatpush1.bf16.msra.mxu1 %v2896_v15 }
 0x1a9   :  { %1175 = vmatprep.subr.bf16.mxu1 %v2901_v17 }
 0x1ac   :  { %1176 = vmatpush1.bf16.msra.mxu1 %v2899_v18  ;;  %v2350_v18 = vld [vmem:[%s3517_s4] sm:$0x3] }
 0x1ad   :  { %1177 = vmatprep.subr.bf16.mxu1 %v2904_v23  ;;  %v2355_v23 = vrot.slane %v2350_v18, %v3348_v59 }
 0x1b0   :  { %1178 = vmatpush1.bf16.msra.mxu1 %v2902_v28 }
 0x1b1   :  { %1179 = vmatprep.subr.bf16.mxu1 %v2907_v31  ;;  %v2359_v31 = vrot.slane %v2350_v18, %v3353_v61 }
 0x1b4   :  { %1180 = vmatpush1.bf16.msra.mxu1 %v2905_v24 }
 0x1b5   :  { %1855 = vmatprep.subr.bf16.mxu1 %v2911_v27 }
 0x1b7   :  { %1182 = vmatmul.mubr.bf16.vlgmr.msra.gmra.mrb[0].mxu1 %v983_v32 }
 0x1b8   :  { %1856 = vmatpush1.bf16.msra.mxu1 %v2909_v38  ;;  %1887 = vmatprep.mubr.bf16.mxu1 %v3451_v6  ;;  %v2954_v6 = vld [vmem:[#allocation3 + $0x1f0] ss:$8 sps:$4 sm:$0xff]  }
 0x1b9   :  { %1857 = vmatprep.subr.bf16.mxu1 %v2914_v21 }
 0x1bc   :  { %1858 = vmatpush1.bf16.msra.mxu1 %v2912_v20 }
 0x1bd   :  { %1859 = vmatprep.subr.bf16.mxu1 %v2917_v62 }
 0x1c0   :  { %1860 = vmatpush1.bf16.msra.mxu1 %v2915_v39 }
 0x1c1   :  { %1861 = vmatprep.subr.bf16.mxu1 %v2920_v7 }
 0x1c4   :  { %1862 = vmatpush1.bf16.msra.mxu1 %v2918_v13 }
 0x1c5   :  { %1863 = vmatprep.subr.bf16.mxu1 %v2923_v4 }
 0x1c8   :  { %1864 = vmatpush1.bf16.msra.mxu1 %v2921_v40 }
 0x1c9   :  { %1865 = vmatprep.subr.bf16.mxu1 %v2926_v57 }
 0x1cc   :  { %1866 = vmatpush1.bf16.msra.mxu1 %v2924_v41 }
 0x1cd   :  { %1867 = vmatprep.subr.bf16.mxu1 %v2929_v42 }
 0x1d0   :  { %1868 = vmatpush1.bf16.msra.mxu1 %v2927_v34 }
 0x1d1   :  { %1869 = vmatprep.subr.bf16.mxu1 %v2932_v36 }
 0x1d4   :  { %1870 = vmatpush1.bf16.msra.mxu1 %v2930_v60 }
 0x1d5   :  { %1871 = vmatprep.subr.bf16.mxu1 %v2935_v63 }
 0x1d8   :  { %1872 = vmatpush1.bf16.msra.mxu1 %v2933_v1 }
 0x1d9   :  { %1873 = vmatprep.subr.bf16.mxu1 %v2938_v43 }
 0x1dc   :  { %1874 = vmatpush1.bf16.msra.mxu1 %v2936_v2 }
 0x1dd   :  { %1875 = vmatprep.subr.bf16.mxu1 %v2941_v44 }
 0x1e0   :  { %1876 = vmatpush1.bf16.msra.mxu1 %v2939_v9 }
 0x1e1   :  { %1877 = vmatprep.subr.bf16.mxu1 %v2944_v14 }
 0x1e4   :  { %1878 = vmatpush1.bf16.msra.mxu1 %v2942_v12 }
 0x1e5   :  { %1879 = vmatprep.subr.bf16.mxu1 %v2947_v3 }
 0x1e8   :  { %1880 = vmatpush1.bf16.msra.mxu1 %v2945_v16 }
 0x1e9   :  { %1881 = vmatprep.subr.bf16.mxu1 %v2950_v0 }
 0x1ec   :  { %1882 = vmatpush1.bf16.msra.mxu1 %v2948_v45 }
 0x1ed   :  { %1883 = vmatprep.subr.bf16.mxu1 %v2953_v19 }
 0x1f0   :  { %1884 = vmatpush1.bf16.msra.mxu1 %v2951_v5 }
 0x1f1   :  { %1885 = vmatprep.subr.bf16.mxu1 %v2956_v46 }
 0x1f4   :  { %1886 = vmatpush1.bf16.msra.mxu1 %v2954_v6 }
 0x1f7   :  { %1888 = vmatmul.mubr.bf16.vlgmr.msra.gmra.mrb[4].mxu1 %v3454_v22 }
 0x26d   :  { %v2337_v8 = vpop.f32.mrb[8].mxu0 }
 0x26e   :  { %v2339_v10 = vpop.f32.mrb[9].mxu0 }
 0x26f   :  { %v2341_v47 = vpop.f32.mrb[10].mxu0 }
 0x270   :  { %v2343_v48 = vpop.f32.mrb[11].mxu0 }
 0x28a   :  { %v1183_v50 = vpop.f32.mrb[0].mxu1 }
 0x28b   :  { %v1208_v51 = vadd.f32 %v1201_v11, %v1183_v50  ;;  %v1185_v52 = vpop.f32.mrb[1].mxu1 }
 0x28c   :  { %v1209_v53 = vadd.f32 %v1205_v49, %v1185_v52  ;;  %v1187_v54 = vpop.f32.mrb[2].mxu1 }
 0x28d   :  { %v1212_v55 = vmax.f32 %v1208_v51, 0.0  ;;  %v1210_v56 = vadd.f32 %v1201_v11, %v1187_v54  ;;  %v1189_v22 = vpop.f32.mrb[3].mxu1 }
 0x28e   :  { %v1213_v58 = vmax.f32 %v1209_v53, 0.0  ;;  %v1211_v29 = vadd.f32 %v1205_v49, %v1189_v22 }
 0x28f   :  { %1216 = vst [vmem:[%s3518_s5] sm:$0xff] %v1212_v55  ;;  %v1214_v15 = vmax.f32 %v1210_v56, 0.0 }
 0x290   :  { %1217 = vst [vmem:[%s3518_s5 + $0x8] sm:$0xff] %v1213_v58  ;;  %v1215_v17 = vmax.f32 %v1211_v29, 0.0 }
 0x291   :  { %1218 = vst [vmem:[%s3518_s5 + $0x10] sm:$0xff] %v1214_v15 }
 0x292   :  { %1219 = vst [vmem:[%s3518_s5 + $0x18] sm:$0xff] %v1215_v17 }
 0x2ca   :  { %v1889_v28 = vpop.f32.mrb[4].mxu1 }
 0x2cb   :  { %v2685_v24 = vadd.f32 %v2337_v8, %v1889_v28  ;;  %v1891_v26 = vpop.f32.mrb[5].mxu1 }
 0x2cc   :  { %v2686_v33 = vadd.f32 %v2339_v10, %v1891_v26  ;;  %v1893_v35 = vpop.f32.mrb[6].mxu1 }
 0x2cd   :  { %v2362_v27 = vadd.f32 %v2685_v24, %v2355_v23  ;;  %v2687_v30 = vadd.f32 %v2341_v47, %v1893_v35  ;;  %v1895_v37 = vpop.f32.mrb[7].mxu1 }
 0x2ce   :  { %v2363_v38 = vadd.f32 %v2686_v33, %v2359_v31  ;;  %v2688_v21 = vadd.f32 %v2343_v48, %v1895_v37 }
 0x2cf   :  { %v2366_v32 = vmax.f32 %v2362_v27, 0.0  ;;  %v2364_v20 = vadd.f32 %v2687_v30, %v2355_v23 }
 0x2d0   :  { %v2367_v62 = vmax.f32 %v2363_v38, 0.0  ;;  %v2365_v39 = vadd.f32 %v2688_v21, %v2359_v31 }
 0x2d1   :  { %2677 = vst [vmem:[%s3518_s5 + $0x20] sm:$0xff] %v2366_v32  ;;  %v2368_v59 = vmax.f32 %v2364_v20, 0.0 }
 0x2d2   :  { %2678 = vst [vmem:[%s3518_s5 + $0x28] sm:$0xff] %v2367_v62  ;;  %v2369_v61 = vmax.f32 %v2365_v39, 0.0 }
 0x2d3   :  { %2679 = vst [vmem:[%s3518_s5 + $0x30] sm:$0xff] %v2368_v59 }
 0x2d4   :  { %2680 = vst [vmem:[%s3518_s5 + $0x38] sm:$0xff] %v2369_v61 }
 0x2d5   :  { %2379 = vsyncpa [#allocation4], 1 }

</bundles_post_ra>
